<compile_context>
chip_gen: v5e
topology: v5e:2x2
jax: 0.10.0
libtpu: 0.0.40
codegen_flags: <defaults>
</compile_context>

<pallas_src>
import numpy as np
import jax
import jax.numpy as jnp
from jax.experimental import pallas as pl
from jax.experimental.pallas import tpu as pltpu

# --------------------------- configuration ----------------------------------
B = 8            # batch (multiple of 8 -> sublane-dense)
T = 16           # frames averaged over (dim=1 of x)
INPUT_DIM = 128  # per-frame feature dim (lane-dense)
HIDDEN = 256     # fixed by the module: nn.Linear(input_dim, 256)
CLASS_NUM = 10   # classifier classes
CLASS_PAD = 128  # classifier padded to 128 lanes for unmasked stores
F32 = jnp.float32


# ------------------------------ kernel ---------------------------------------
def _video_avg_kernel(x_ref, p_ref, w1_ref, b1_ref, w2_ref, b2_ref, o_ref):
    """Fused forward: temporal mean-pool -> Linear+ReLU -> (Dropout=id) -> Linear.

    x_ref  : (B*T, INPUT_DIM)     frames flattened over (batch, time)
    p_ref  : (B, B*T)             block-averaging selector (1/T on own frames)
    w1_ref : (INPUT_DIM, HIDDEN)  b1_ref : (1, HIDDEN)
    w2_ref : (HIDDEN, CLASS_PAD)  b2_ref : (1, CLASS_PAD)   (zero-padded cols)
    o_ref  : (B, CLASS_PAD)       lanes [0, CLASS_NUM) hold the logits
    """
    # mean over frames as an MXU matmul with the constant selector
    pooled = jnp.dot(p_ref[...], x_ref[...], preferred_element_type=F32)      # (B, D)
    # Linear(input_dim, 256) + ReLU
    h = jnp.dot(pooled, w1_ref[...], preferred_element_type=F32) + b1_ref[...]
    h = jnp.maximum(h, 0.0)
    # Dropout: identity in eval/inference mode.
    # Linear(256, class_num) — padded to 128 lanes (lane-dense store)
    o_ref[...] = jnp.dot(h, w2_ref[...], preferred_element_type=F32) + b2_ref[...]


# ------------------------------ wrapper ---------------------------------------
def _vmem_spec():
    return pl.BlockSpec(memory_space=pltpu.MemorySpace.VMEM)


def video_average_features_forward(x, pool_sel, w1, b1, w2_pad, b2_pad, class_num):
    b, t, d = x.shape
    x2d = x.reshape(b * t, d)                        # contiguous, free reshape
    out_pad = pl.pallas_call(
        _video_avg_kernel,
        out_shape=jax.ShapeDtypeStruct((b, CLASS_PAD), F32),
        in_specs=[_vmem_spec()] * 6,
        out_specs=_vmem_spec(),
    )(x2d, pool_sel, w1, b1, w2_pad, b2_pad)
    return out_pad[:, :class_num]


# --------------------------- parameter init ----------------------------------
def _init_linear(key, fan_in, fan_out):
    k1, k2 = jax.random.split(key)
    bound = 1.0 / np.sqrt(fan_in)
    w = jax.random.uniform(k1, (fan_in, fan_out), F32, -bound, bound)   # (in, out)
    b = jax.random.uniform(k2, (1, fan_out), F32, -bound, bound)
    return w, b


class VideoAverageFeaturesPallas:
    """Pallas port of VideoAverageFeatures(input_dim, class_num)."""

    def __init__(self, key, input_dim=INPUT_DIM, class_num=CLASS_NUM,
                 batch=B, frames=T):
        k1, k2 = jax.random.split(key)
        self.class_num = class_num
        self.w1, self.b1 = _init_linear(k1, input_dim, HIDDEN)
        self.w2, self.b2 = _init_linear(k2, HIDDEN, class_num)
        # zero-pad the classifier to 128 lanes (done once at init, not per call)
        self.w2_pad = jnp.zeros((HIDDEN, CLASS_PAD), F32).at[:, :class_num].set(self.w2)
        self.b2_pad = jnp.zeros((1, CLASS_PAD), F32).at[:, :class_num].set(self.b2)
        # constant block-averaging selector: (B, B*T), 1/T over each sample's frames
        self.pool_sel = (jnp.kron(jnp.eye(batch, dtype=F32),
                                  jnp.ones((1, frames), F32)) / float(frames))

    def forward(self, x):
        return video_average_features_forward(
            x, self.pool_sel, self.w1, self.b1, self.w2_pad, self.b2_pad,
            self.class_num)

    # pure-JAX reference of the PyTorch forward (eval mode)
    def reference(self, x):
        pooled = jnp.mean(x, axis=1)
        h = jnp.maximum(pooled @ self.w1 + self.b1, 0.0)
        return h @ self.w2 + self.b2


# ---------------------------------- main --------------------------------------
if __name__ == "__main__":
    key = jax.random.PRNGKey(0)
    k_model, k_x = jax.random.split(key)

    model = VideoAverageFeaturesPallas(k_model)
    x = jax.random.normal(k_x, (B, T, INPUT_DIM), F32)   # (batch, frames, feat)

    logits = jax.block_until_ready(model.forward(x))

    ref = model.reference(x)
    np.testing.assert_allclose(np.asarray(logits), np.asarray(ref),
                               rtol=1e-4, atol=1e-4)
    assert logits.shape == (B, CLASS_NUM)

    print("KERNEL_OK")
</pallas_src>

<mosaic_0001>
module attributes {stable_mosaic.version = 11 : i64} {
  func.func @_video_avg_kernel(%arg0: memref<128x128xf32, #tpu.memory_space<vmem>>, %arg1: memref<8x128xf32, #tpu.memory_space<vmem>>, %arg2: memref<128x256xf32, #tpu.memory_space<vmem>>, %arg3: memref<1x256xf32, #tpu.memory_space<vmem>>, %arg4: memref<256x128xf32, #tpu.memory_space<vmem>>, %arg5: memref<1x128xf32, #tpu.memory_space<vmem>>, %arg6: memref<8x128xf32, #tpu.memory_space<vmem>>) attributes {dimension_semantics = [], scalar_prefetch = 0 : i64, scratch_operands = 0 : i64, tpu.core_type = #tpu.core_type<tc>} {
    %c0 = arith.constant 0 : index
    %c0_0 = arith.constant 0 : index
    %0 = vector.load %arg1[%c0, %c0_0] : memref<8x128xf32, #tpu.memory_space<vmem>>, vector<8x128xf32>
    %c0_1 = arith.constant 0 : index
    %c0_2 = arith.constant 0 : index
    %1 = vector.load %arg0[%c0_1, %c0_2] : memref<128x128xf32, #tpu.memory_space<vmem>>, vector<128x128xf32>
    %cst = arith.constant dense<0.000000e+00> : vector<8x128xf32>
    %2 = tpu.matmul %0, %1, %cst {dimension_numbers = #tpu.dot_dimension_numbers<[1], [0], [0], [1], [0, 0, 1, 1], [], []>} : vector<8x128xf32>, vector<128x128xf32>, vector<8x128xf32> -> vector<8x128xf32>
    %c0_3 = arith.constant 0 : index
    %c0_4 = arith.constant 0 : index
    %3 = vector.load %arg2[%c0_3, %c0_4] : memref<128x256xf32, #tpu.memory_space<vmem>>, vector<128x256xf32>
    %cst_5 = arith.constant dense<0.000000e+00> : vector<8x256xf32>
    %4 = tpu.matmul %2, %3, %cst_5 {dimension_numbers = #tpu.dot_dimension_numbers<[1], [0], [0], [1], [0, 0, 1, 1], [], []>} : vector<8x128xf32>, vector<128x256xf32>, vector<8x256xf32> -> vector<8x256xf32>
    %c0_6 = arith.constant 0 : index
    %c0_7 = arith.constant 0 : index
    %5 = vector.load %arg3[%c0_6, %c0_7] : memref<1x256xf32, #tpu.memory_space<vmem>>, vector<1x256xf32>
    %6 = vector.broadcast %5 : vector<1x256xf32> to vector<8x256xf32>
    %7 = arith.addf %4, %6 : vector<8x256xf32>
    %cst_8 = arith.constant 0.000000e+00 : f32
    %8 = vector.broadcast %cst_8 : f32 to vector<8x256xf32>
    %9 = arith.maximumf %7, %8 : vector<8x256xf32>
    %c0_9 = arith.constant 0 : index
    %c0_10 = arith.constant 0 : index
    %10 = vector.load %arg4[%c0_9, %c0_10] : memref<256x128xf32, #tpu.memory_space<vmem>>, vector<256x128xf32>
    %cst_11 = arith.constant dense<0.000000e+00> : vector<8x128xf32>
    %11 = tpu.matmul %9, %10, %cst_11 {dimension_numbers = #tpu.dot_dimension_numbers<[1], [0], [0], [1], [0, 0, 1, 1], [], []>} : vector<8x256xf32>, vector<256x128xf32>, vector<8x128xf32> -> vector<8x128xf32>
    %c0_12 = arith.constant 0 : index
    %c0_13 = arith.constant 0 : index
    %12 = vector.load %arg5[%c0_12, %c0_13] : memref<1x128xf32, #tpu.memory_space<vmem>>, vector<1x128xf32>
    %13 = vector.broadcast %12 : vector<1x128xf32> to vector<8x128xf32>
    %14 = arith.addf %11, %13 : vector<8x128xf32>
    %c0_14 = arith.constant 0 : index
    %c0_15 = arith.constant 0 : index
    %15 = vector.load %arg6[%c0_14, %c0_15] : memref<8x128xf32, #tpu.memory_space<vmem>>, vector<8x128xf32>
    tpu.vector_store %arg6[%c0_14, %c0_15], %14 {strides = array<i32>} : memref<8x128xf32, #tpu.memory_space<vmem>>, vector<8x128xf32>,
    return
  }
}

</mosaic_0001>

<bundles_post_ra>
// kernel: tpu_custom_call.1
= control target key start
LH: loop header
LB: loop body
LE: loop exit
PB: predicated region body
PF: predicated region fallthrough
CT: control target
= control target key end

     0   :  { %11 = vsyncpa [#allocation3], 0  ;;  %s501_s0 = inlined_call_operand.hbm [shape: f32[128,128], index: 0, kind: input, shape index: {}]   ;;  %s502_s1 = inlined_call_operand.hbm [shape: f32[8,128], index: 1, kind: input, shape index: {}]   ;;  %s503_s2 = inlined_call_operand.hbm [shape: f32[128,256], index: 2, kind: input, shape index: {}]   ;;  %s504_s3 = inlined_call_operand.vmem [shape: f32[1,256], index: 3, kind: input, shape index: {}]   ;;  %s505_s4 = inlined_call_operand.hbm [shape: f32[256,128], index: 4, kind: input, shape index: {}]   ;;  %s506_s5 = inlined_call_operand.vmem [shape: f32[1,128], index: 5, kind: input, shape index: {}]   ;;  %s507_s6 = inlined_call_operand.hbm [shape: f32[8,128], index: 6, kind: output, shape index: {}]  }
   0x1   :  { %12 = vsyncpa [#allocation6], 0 }
   0x2   :  { %13 = vsyncpa [#allocation9], 0  ;;  %s33_s23 = sshll.u32 %s502_s1, 4  ;;  %s34_s23 = int_to_ptr.hbm [resolvable:$true] %s33_s23 }
   0x3   :  { %14 = vsyncpa [#allocation4], 0  ;;  %s436_s24 = smov [#allocation5]   ;;  %s19_s28 = sshll.u32 %s501_s0, 4  ;;  %s20_s28 = int_to_ptr.hbm [resolvable:$true] %s19_s28 }
   0x4   :  { %s35_s25 = sshll.u32 %s436_s24, 4  ;;  %s437_s29 = smov [#allocation2]   ;;  %s36_s25 = int_to_ptr.vmem [resolvable:$true] %s35_s25 }
   0x5   :  { %38 = dma.hbm_to_vmem [thread:$0]  %s34_s23, 128, %s36_s25, [#allocation6]  }
   0x6   :  { %s21_s30 = sshll.u32 %s437_s29, 4  ;;  %s438_s7 = smov 128   ;;  %s22_s30 = int_to_ptr.vmem [resolvable:$true] %s21_s30 }
   0x7   :  { %s439_s8 = smov 8   ;;  %s43_s1 = sshll.u32 %s503_s2, 4  ;;  %s44_s1 = int_to_ptr.hbm [resolvable:$true] %s43_s1 }
   0x8   :  { %27 = dma.hbm_to_vmem [thread:$0]  %s20_s28, 2048, %s22_s30, [#allocation3], %s438_s7, %s438_s7, %s439_s8  }
   0x9   :  { %s440_s11 = smov [#allocation7]   ;;  %s58_s0 = sshll.u32 %s505_s4, 4  ;;  %s59_s0 = int_to_ptr.hbm [resolvable:$true] %s58_s0 }
   0xa   :  { %s45_s12 = sshll.u32 %s440_s11, 4  ;;  %s441_s15 = smov 256   ;;  %s46_s12 = int_to_ptr.vmem [resolvable:$true] %s45_s12 }
   0xb   :  { %s442_s16 = smov 16   ;;  %s443_s17 = smov [#allocation8]  }
   0xc   :  { %51 = dma.hbm_to_vmem [thread:$0]  %s44_s1, 4096, %s46_s12, [#allocation6], %s441_s15, %s441_s15, %s442_s16  }
   0xd   :  { %s60_s18 = sshll.u32 %s443_s17, 4  ;;  %s61_s18 = int_to_ptr.vmem [resolvable:$true] %s60_s18 }
   0xe   :  { %66 = dma.hbm_to_vmem [thread:$0]  %s59_s0, 4096, %s61_s18, [#allocation9], %s438_s7, %s438_s7, %s439_s8  }
   0xf   :  { %428 = dma.done.wait [#allocation3], 2048  }
  0x10   :  { %429 = vsyncadd [#allocation3], 4294965248 }
  0x11   :  { %430 = dma.done.wait [#allocation6], 4224  }
  0x12   :  { %431 = vsyncadd [#allocation6], 4294963072 }
  0x13   :  { %432 = dma.done.wait [#allocation9], 4096  }
  0x14   :  { %433 = vsyncadd [#allocation9], 4294963200  ;;  %v101_v0 = vld [vmem:[#allocation2 + $0x78] sm:$0xff]  ;;  %v100_v1 = vld [vmem:[#allocation2 + $0x70] sm:$0xff]  ;;  %s444_s21 = smov [#allocation10]  }
  0x15   :  { %102 = vmatpush.msra.mxu0 %v101_v0  ;;  %v99_v2 = vld [vmem:[#allocation2 + $0x68] sm:$0xff]  ;;  %v98_v3 = vld [vmem:[#allocation2 + $0x60] sm:$0xff]  ;;  %v97_v4 = vld [vmem:[#allocation2 + $0x58] sm:$0xff]  ;;  %s284_s22 = sshll.u32 %s444_s21, 4  ;;  %s285_s22 = int_to_ptr.vmem [resolvable:$true] %s284_s22 }
  0x16   :  { %v152_v5 = vld [vmem:[#allocation7 + $0xf0] sm:$0xff]  ;;  %v153_v6 = vld [vmem:[#allocation7 + $0xf8] sm:$0xff]  ;;  %v150_v7 = vld [vmem:[#allocation7 + $0xe0] sm:$0xff] }
  0x17   :  { %103 = vmatpush.msra.mxu0 %v100_v1  ;;  %160 = vmatpush.msra.mxu1 %v152_v5  ;;  %v151_v8 = vld [vmem:[#allocation7 + $0xe8] sm:$0xff]  ;;  %v148_v9 = vld [vmem:[#allocation7 + $0xd0] sm:$0xff]  ;;  %v149_v11 = vld [vmem:[#allocation7 + $0xd8] sm:$0xff] }
  0x18   :  { %180 = vmatpush.msra.mxu2 %v153_v6  ;;  %v96_v10 = vld [vmem:[#allocation2 + $0x50] sm:$0xff]  ;;  %v146_v12 = vld [vmem:[#allocation7 + $0xc0] sm:$0xff]  ;;  %v144_v15 = vld [vmem:[#allocation7 + $0xb0] sm:$0xff] }
  0x19   :  { %104 = vmatpush.msra.mxu0 %v99_v2  ;;  %161 = vmatpush.msra.mxu1 %v150_v7  ;;  %v95_v13 = vld [vmem:[#allocation2 + $0x48] sm:$0xff]  ;;  %v147_v14 = vld [vmem:[#allocation7 + $0xc8] sm:$0xff]  ;;  %v94_v16 = vld [vmem:[#allocation2 + $0x40] sm:$0xff] }
  0x1a   :  { %181 = vmatpush.msra.mxu2 %v151_v8  ;;  %v145_v17 = vld [vmem:[#allocation7 + $0xb8] sm:$0xff]  ;;  %v142_v18 = vld [vmem:[#allocation7 + $0xa0] sm:$0xff]  ;;  %v93_v19 = vld [vmem:[#allocation2 + $0x38] sm:$0xff] }
  0x1b   :  { %105 = vmatpush.msra.mxu0 %v98_v3  ;;  %162 = vmatpush.msra.mxu1 %v148_v9  ;;  %v143_v20 = vld [vmem:[#allocation7 + $0xa8] sm:$0xff]  ;;  %v140_v21 = vld [vmem:[#allocation7 + $0x90] sm:$0xff]  ;;  %v141_v23 = vld [vmem:[#allocation7 + $0x98] sm:$0xff] }
  0x1c   :  { %182 = vmatpush.msra.mxu2 %v149_v11  ;;  %v92_v22 = vld [vmem:[#allocation2 + $0x30] sm:$0xff]  ;;  %v138_v24 = vld [vmem:[#allocation7 + $0x80] sm:$0xff]  ;;  %v136_v27 = vld [vmem:[#allocation7 + $0x70] sm:$0xff] }
  0x1d   :  { %106 = vmatpush.msra.mxu0 %v97_v4  ;;  %163 = vmatpush.msra.mxu1 %v146_v12  ;;  %v91_v25 = vld [vmem:[#allocation2 + $0x28] sm:$0xff]  ;;  %v139_v26 = vld [vmem:[#allocation7 + $0x88] sm:$0xff]  ;;  %v90_v28 = vld [vmem:[#allocation2 + $0x20] sm:$0xff] }
  0x1e   :  { %183 = vmatpush.msra.mxu2 %v147_v14  ;;  %v137_v29 = vld [vmem:[#allocation7 + $0x78] sm:$0xff]  ;;  %v134_v30 = vld [vmem:[#allocation7 + $0x60] sm:$0xff]  ;;  %v89_v31 = vld [vmem:[#allocation2 + $0x18] sm:$0xff] }
  0x1f   :  { %107 = vmatpush.msra.mxu0 %v96_v10  ;;  %164 = vmatpush.msra.mxu1 %v144_v15  ;;  %v135_v32 = vld [vmem:[#allocation7 + $0x68] sm:$0xff]  ;;  %v132_v33 = vld [vmem:[#allocation7 + $0x50] sm:$0xff]  ;;  %v133_v35 = vld [vmem:[#allocation7 + $0x58] sm:$0xff] }
  0x20   :  { %184 = vmatpush.msra.mxu2 %v145_v17  ;;  %v88_v34 = vld [vmem:[#allocation2 + $0x10] sm:$0xff]  ;;  %v130_v36 = vld [vmem:[#allocation7 + $0x40] sm:$0xff]  ;;  %v128_v39 = vld [vmem:[#allocation7 + $0x30] sm:$0xff] }
  0x21   :  { %108 = vmatpush.msra.mxu0 %v95_v13  ;;  %165 = vmatpush.msra.mxu1 %v142_v18  ;;  %v87_v37 = vld [vmem:[#allocation2 + $0x8] sm:$0xff]  ;;  %v131_v38 = vld [vmem:[#allocation7 + $0x48] sm:$0xff]  ;;  %v86_v40 = vld [vmem:[#allocation2] sm:$0xff] }
  0x22   :  { %185 = vmatpush.msra.mxu2 %v143_v20  ;;  %v129_v41 = vld [vmem:[#allocation7 + $0x38] sm:$0xff]  ;;  %v126_v43 = vld [vmem:[#allocation7 + $0x20] sm:$0xff]  ;;  %v127_v44 = vld [vmem:[#allocation7 + $0x28] sm:$0xff] }
  0x23   :  { %109 = vmatpush.msra.mxu0 %v94_v16  ;;  %166 = vmatpush.msra.mxu1 %v140_v21  ;;  %v85_v42 = vld [vmem:[#allocation5] sm:$0xff]  ;;  %v124_v45 = vld [vmem:[#allocation7 + $0x10] sm:$0xff]  ;;  %v122_v47 = vld [vmem:[#allocation7] sm:$0xff] }
  0x24   :  { %186 = vmatpush.msra.mxu2 %v141_v23  ;;  %v125_v46 = vld [vmem:[#allocation7 + $0x18] sm:$0xff]  ;;  %v123_v48 = vld [vmem:[#allocation7 + $0x8] sm:$0xff]  ;;  %v216_v50 = vld [vmem:[#allocation8 + $0x70] sm:$0xff] }
  0x25   :  { %110 = vmatpush.msra.mxu0 %v93_v19  ;;  %167 = vmatpush.msra.mxu1 %v138_v24  ;;  %v217_v49 = vld [vmem:[#allocation8 + $0x78] sm:$0xff]  ;;  %v215_v52 = vld [vmem:[#allocation8 + $0x68] sm:$0xff]  ;;  %v232_v53 = vld [vmem:[#allocation8 + $0xf0] sm:$0xff] }
  0x26   :  { %187 = vmatpush.msra.mxu2 %v139_v26  ;;  %238 = vmatpush.msra.mxu3 %v217_v49  ;;  %v233_v51 = vld [vmem:[#allocation8 + $0xf8] sm:$0xff]  ;;  %v231_v54 = vld [vmem:[#allocation8 + $0xe8] sm:$0xff]  ;;  %v214_v55 = vld [vmem:[#allocation8 + $0x60] sm:$0xff] }
  0x27   :  { %111 = vmatpush.msra.mxu0 %v92_v22  ;;  %168 = vmatpush.msra.mxu1 %v136_v27  ;;  %v230_v56 = vld [vmem:[#allocation8 + $0xe0] sm:$0xff]  ;;  %v213_v57 = vld [vmem:[#allocation8 + $0x58] sm:$0xff]  ;;  %v212_v59 = vld [vmem:[#allocation8 + $0x50] sm:$0xff] }
  0x28   :  { %188 = vmatpush.msra.mxu2 %v137_v29  ;;  %239 = vmatpush.msra.mxu3 %v216_v50  ;;  %v229_v58 = vld [vmem:[#allocation8 + $0xd8] sm:$0xff]  ;;  %v228_v60 = vld [vmem:[#allocation8 + $0xd0] sm:$0xff]  ;;  %v211_v61 = vld [vmem:[#allocation8 + $0x48] sm:$0xff] }
  0x29   :  { %112 = vmatpush.msra.mxu0 %v91_v25  ;;  %169 = vmatpush.msra.mxu1 %v134_v30  ;;  %v227_v62 = vld [vmem:[#allocation8 + $0xc8] sm:$0xff]  ;;  %v210_v63 = vld [vmem:[#allocation8 + $0x40] sm:$0xff]  ;;  %v209_v1 = vld [vmem:[#allocation8 + $0x38] sm:$0xff] }
  0x2a   :  { %189 = vmatpush.msra.mxu2 %v135_v32  ;;  %240 = vmatpush.msra.mxu3 %v215_v52  ;;  %v226_v0 = vld [vmem:[#allocation8 + $0xc0] sm:$0xff]  ;;  %v225_v2 = vld [vmem:[#allocation8 + $0xb8] sm:$0xff]  ;;  %v208_v3 = vld [vmem:[#allocation8 + $0x30] sm:$0xff] }
  0x2b   :  { %113 = vmatpush.msra.mxu0 %v90_v28  ;;  %170 = vmatpush.msra.mxu1 %v132_v33  ;;  %v224_v4 = vld [vmem:[#allocation8 + $0xb0] sm:$0xff]  ;;  %v207_v5 = vld [vmem:[#allocation8 + $0x28] sm:$0xff]  ;;  %v206_v6 = vld [vmem:[#allocation8 + $0x20] sm:$0xff] }
  0x2c   :  { %190 = vmatpush.msra.mxu2 %v133_v35  ;;  %241 = vmatpush.msra.mxu3 %v214_v55  ;;  %v205_v7 = vld [vmem:[#allocation8 + $0x18] sm:$0xff]  ;;  %v204_v9 = vld [vmem:[#allocation8 + $0x10] sm:$0xff]  ;;  %v223_v10 = vld [vmem:[#allocation8 + $0xa8] sm:$0xff] }
  0x2d   :  { %114 = vmatpush.msra.mxu0 %v89_v31  ;;  %171 = vmatpush.msra.mxu1 %v130_v36  ;;  %v203_v11 = vld [vmem:[#allocation8 + $0x8] sm:$0xff]  ;;  %v222_v12 = vld [vmem:[#allocation8 + $0xa0] sm:$0xff]  ;;  %v221_v14 = vld [vmem:[#allocation8 + $0x98] sm:$0xff] }
  0x2e   :  { %191 = vmatpush.msra.mxu2 %v131_v38  ;;  %242 = vmatpush.msra.mxu3 %v213_v57  ;;  %v202_v13 = vld [vmem:[#allocation8] sm:$0xff]  ;;  %v220_v15 = vld [vmem:[#allocation8 + $0x90] sm:$0xff]  ;;  %v219_v16 = vld [vmem:[#allocation8 + $0x88] sm:$0xff] }
  0x2f   :  { %115 = vmatpush.msra.mxu0 %v88_v34  ;;  %172 = vmatpush.msra.mxu1 %v128_v39  ;;  %v218_v17 = vld [vmem:[#allocation8 + $0x80] sm:$0xff]  ;;  %v154_v18 = vld [vmem:[%s504_s3] sm:$0x3]  ;;  %s286_s3 = sshll.u32 %s507_s6, 4  ;;  %s287_s3 = int_to_ptr.hbm [resolvable:$true] %s286_s3 }
  0x30   :  { %192 = vmatpush.msra.mxu2 %v129_v41  ;;  %243 = vmatpush.msra.mxu3 %v212_v59  ;;  %v156_v19 = vperm.slane %v154_v18, 0  ;;  %v157_v23 = vperm.slane %v154_v18, 1  ;;  %v307_v27 = vld [vmem:[%s506_s5] ss:$0 sm:$0xff] }
  0x31   :  { %116 = vmatpush.msra.mxu0 %v87_v37  ;;  %173 = vmatpush.msra.mxu1 %v126_v43 }
  0x32   :  { %193 = vmatpush.msra.mxu2 %v127_v44  ;;  %244 = vmatpush.msra.mxu3 %v211_v61 }
  0x33   :  { %117 = vmatpush.msra.mxu0 %v86_v40  ;;  %174 = vmatpush.msra.mxu1 %v124_v45 }
  0x34   :  { %118 = vmatmul.f32.vlgmr.msra.gmra.mxu0 %v85_v42  ;;  %194 = vmatpush.msra.mxu2 %v125_v46 }
  0x35   :  { %175 = vmatpush.msra.mxu1 %v122_v47  ;;  %258 = vmatpush.msrb.mxu0 %v233_v51 }
  0x36   :  { %195 = vmatpush.msra.mxu2 %v123_v48  ;;  %245 = vmatpush.msra.mxu3 %v210_v63 }
  0x37   :  { %259 = vmatpush.msrb.mxu0 %v232_v53 }
  0x38   :  { %246 = vmatpush.msra.mxu3 %v209_v1 }
  0x39   :  { %260 = vmatpush.msrb.mxu0 %v231_v54 }
  0x3a   :  { %247 = vmatpush.msra.mxu3 %v208_v3 }
  0x3b   :  { %261 = vmatpush.msrb.mxu0 %v230_v56 }
  0x3c   :  { %248 = vmatpush.msra.mxu3 %v207_v5 }
  0x3d   :  { %262 = vmatpush.msrb.mxu0 %v229_v58 }
  0x3e   :  { %249 = vmatpush.msra.mxu3 %v206_v6 }
  0x3f   :  { %263 = vmatpush.msrb.mxu0 %v228_v60 }
  0x40   :  { %250 = vmatpush.msra.mxu3 %v205_v7 }
  0x41   :  { %264 = vmatpush.msrb.mxu0 %v227_v62 }
  0x42   :  { %251 = vmatpush.msra.mxu3 %v204_v9 }
  0x43   :  { %265 = vmatpush.msrb.mxu0 %v226_v0 }
  0x44   :  { %252 = vmatpush.msra.mxu3 %v203_v11 }
  0x45   :  { %266 = vmatpush.msrb.mxu0 %v225_v2 }
  0x46   :  { %253 = vmatpush.msra.mxu3 %v202_v13 }
  0x47   :  { %267 = vmatpush.msrb.mxu0 %v224_v4 }
  0x49   :  { %268 = vmatpush.msrb.mxu0 %v223_v10 }
  0x4b   :  { %269 = vmatpush.msrb.mxu0 %v222_v12 }
  0x4d   :  { %270 = vmatpush.msrb.mxu0 %v221_v14 }
  0x4f   :  { %271 = vmatpush.msrb.mxu0 %v220_v15 }
  0x51   :  { %272 = vmatpush.msrb.mxu0 %v219_v16 }
  0x53   :  { %273 = vmatpush.msrb.mxu0 %v218_v17 }
  0xb1   :  { %v119_v8 = vpop.f32.mrf.mxu0 }
  0xb2   :  { %176 = vmatmul.f32.vlgmr.msra.gmra.mxu1 %v119_v8  ;;  %196 = vmatmul.f32.vlgmr.msra.gmra.mxu2 %v119_v8 }
 0x12f   :  { %v177_v20 = vpop.f32.mrf.mxu1 }
 0x130   :  { %v178_v21 = vadd.f32 %v177_v20, %v156_v19 }
 0x132   :  { %v200_v22 = vmax.f32 %v178_v21, 0.0 }
 0x134   :  { %254 = vmatmul.f32.vlgmr.msra.gmra.mxu3 %v200_v22 }
 0x135   :  { %v197_v24 = vpop.f32.mrf.mxu2 }
 0x136   :  { %v198_v25 = vadd.f32 %v197_v24, %v157_v23 }
 0x138   :  { %v201_v26 = vmax.f32 %v198_v25, 0.0 }
 0x13a   :  { %274 = vmatmul.f32.vlgmr.msrb.gmra.mxu0 %v201_v26 }
 0x1b7   :  { %v255_v28 = vpop.f32.mrf.mxu3  ;;  %v275_v30 = vpop.f32.mrf.mxu0 }
 0x1b8   :  { %v256_v29 = vadd.f32 %v307_v27, %v255_v28 }
 0x1ba   :  { %v276_v31 = vadd.f32 %v275_v30, %v256_v29 }
 0x1bc   :  { %278 = vst [vmem:[#allocation10] sm:$0xff] %v276_v31 }
 0x1bd   :  { %289 = dma.vmem_to_hbm [thread:$0]  %s285_s22, 128, %s287_s3, [#allocation4]  }
 0x1be   :  { %434 = dma.done.wait [#allocation4], 128  }
 0x1bf   :  { %435 = vsyncadd [#allocation4], 4294967168 }
 0x1c0   :  { %294 = vsyncpa [#allocation3], 1 }
 0x1c1   :  { %295 = vsyncpa [#allocation6], 1 }
 0x1c2   :  { %296 = vsyncpa [#allocation9], 1 }
 0x1c3   :  { %297 = vsyncpa [#allocation4], 1 }

</bundles_post_ra>
